<compile_context>
chip_gen: v7x
topology: tpu7x:2x2x1
jax: 0.10.0
libtpu: 0.0.40
codegen_flags: <defaults>
</compile_context>

<pallas_src>
import functools

import jax
import jax.numpy as jnp
from jax import lax
from jax.experimental import pallas as pl
from jax.experimental.pallas import tpu as pltpu

BITS = 32          # Cluster.bits
BITS_PAD = 128     # hash-bit axis padded to one lane group (lane BITS = validity flag)
K_PAD = 128        # cluster axis padded to one lane group


def _round_up(a, m):
    return -(-a // m) * m


def _vmem_limit_bytes():
    """VMEM budget per pallas_call: ~3/4 of the chip capacity (≈48 MiB on v7x,
    ≈96 MiB on v5e/v6e), falling back to 64 MiB if the query is unavailable."""
    try:
        cap = getattr(pltpu.get_tpu_info(), "vmem_capacity_bytes", None)
        if cap:
            return min(max(int(cap) * 3 // 4, 32 * 1024 * 1024), 128 * 1024 * 1024)
    except Exception:
        pass
    return 64 * 1024 * 1024


_VMEM_LIMIT = _vmem_limit_bytes()


def _row_tiling(n_rows):
    """Row padding + row-tile size (per-grid-step overhead ~0.35us -> big tiles)."""
    l_pad = _round_up(max(n_rows, 128), 128)
    tm = min(l_pad, 1024)
    l_pad = _round_up(l_pad, tm)
    return l_pad, tm


# ------------------------------ PCA fit (single pass) ------------------------------
def _gram_colsum_kernel(x_ref, gram_ref, sum_ref):
    """One pass over the rows: accumulate x^T x and per-column sums.  Padded rows are
    zero, so no masking is needed; cov = gram/n - mean^T mean is formed outside."""
    @pl.when(pl.program_id(0) == 0)
    def _():
        gram_ref[...] = jnp.zeros_like(gram_ref)
        sum_ref[...] = jnp.zeros_like(sum_ref)
    xb = x_ref[...]
    gram_ref[...] += lax.dot_general(xb, xb, (((0,), (0,)), ((), ())),
                                     preferred_element_type=jnp.float32)
    sum_ref[...] += jnp.sum(xb, axis=0, keepdims=True)


def _pca_fit(x_pad, n_rows, output_dim, tm):
    """Fit PCA on the (zero-padded) rows; returns (mean (1,E), proj (E, output_dim))."""
    l_pad, e = x_pad.shape
    # TODO(synk): for very large E, tile the (e,e) gram accumulator over an output
    # grid instead of keeping the full block resident (64 MiB at E=4096 in f32).
    gram, colsum = pl.pallas_call(
        _gram_colsum_kernel,
        out_shape=(jax.ShapeDtypeStruct((e, e), jnp.float32),
                   jax.ShapeDtypeStruct((1, e), jnp.float32)),
        grid=(l_pad // tm,),
        in_specs=[pl.BlockSpec((tm, e), lambda i: (i, 0))],
        out_specs=(pl.BlockSpec((e, e), lambda i: (0, 0)),
                   pl.BlockSpec((1, e), lambda i: (0, 0))),
        compiler_params=pltpu.CompilerParams(
            dimension_semantics=("arbitrary",), vmem_limit_bytes=_VMEM_LIMIT),
    )(x_pad)
    mean = colsum * (1.0 / n_rows)                          # (1, e)
    cov = gram * (1.0 / n_rows) - mean.T @ mean             # (e, e)
    # TODO(synk): torch.eig (general eigendecomposition) has no Pallas equivalent;
    # cov is symmetric PSD so jnp.linalg.eigh matches up to eigenvector sign.
    # Sort by |eigenvalue| descending like the torch code.
    eigvals, eigvecs = jnp.linalg.eigh(cov)
    order = jnp.argsort(-jnp.abs(eigvals))
    proj = jnp.take(eigvecs, order, axis=1)[:, :output_dim]  # (e, output_dim)
    return mean, proj


# ------------------------ LSH hashing (row-tiled, bf16 MXU) ------------------------
def _hash_kernel(x_ref, w_ref, b_ref, bits_ref, *, seq_len):
    """bit_b = (x . w_b + bias_b) > 0.  x stays f32 in HBM (bf16 cast is in-kernel
    VPU filler); lane BITS carries a row-validity flag so the k-means kernel gets
    per-cluster row counts for free out of its bit-count matmul."""
    f32, bf16 = jnp.float32, jnp.bfloat16
    tm = x_ref.shape[0]
    scores = jnp.dot(x_ref[...].astype(bf16), w_ref[...].astype(bf16),
                     preferred_element_type=f32) + b_ref[...]
    bits = jnp.where(scores > 0.0, 1.0, 0.0)                          # (tm, BITS_PAD)
    lane = lax.broadcasted_iota(jnp.int32, (1, BITS_PAD), 1)
    bits = jnp.where(lane == BITS, 1.0, bits)                         # validity column
    row = lax.broadcasted_iota(jnp.int32, (tm, 1), 0) + pl.program_id(0) * tm
    bits = jnp.where(row < seq_len, bits, 0.0)                        # zero padded rows
    # TODO(synk): store bit codes as int8 (v5e/v6e int8 MXU) / fp8 (v7x) per-chip.
    bits_ref[...] = bits.astype(bf16)


# ------------------------ Hamming k-means (row-tiled sweeps) -----------------------
def _kmeans_kernel(bits_ref, cinit_ref, clusters_ref, counts_ref,
                   cent_ref, bcnt_ref, *, seq_len, k, tile_rows):
    """grid = (n_iter + 1 sweeps, row tiles).  Transposed centroids (BITS_PAD, K_PAD)
    and the per-bit / per-cluster count accumulator live in VMEM scratch across the
    whole grid; the last sweep only assigns (no centroid update) and emits outputs."""
    f32, bf16 = jnp.float32, jnp.bfloat16
    it, r = pl.program_id(0), pl.program_id(1)
    n_tiles = pl.num_programs(1)
    last_sweep = pl.num_programs(0) - 1

    @pl.when(jnp.logical_and(it == 0, r == 0))
    def _():
        cent_ref[...] = cinit_ref[...]

    @pl.when(r == 0)
    def _():
        bcnt_ref[...] = jnp.zeros_like(bcnt_ref)

    bits = bits_ref[...]                                  # (tile, BITS_PAD) bf16 {0,1}
    cent_t = cent_ref[...]                                # (BITS_PAD, K_PAD) bf16 {0,1}

    col_idx = lax.broadcasted_iota(jnp.int32, (1, K_PAD), 1).astype(f32)
    penalty = jnp.where(col_idx >= float(k), 1e9, 0.0)    # mask padded clusters
    row = lax.broadcasted_iota(jnp.int32, (tile_rows, 1), 0) + r * tile_rows
    valid = row < seq_len                                 # mask padded rows

    # Hamming distance via MXU: |b xor c| = |b| + |c| - 2 b.c  (all exact integers).
    cross = jnp.dot(bits, cent_t, preferred_element_type=f32)         # (tile, K_PAD)
    row_bits = jnp.sum(bits.astype(f32), axis=-1, keepdims=True)      # (tile, 1)
    cent_sum = jnp.sum(cent_t.astype(f32), axis=0, keepdims=True)     # (1, K_PAD)
    dist = row_bits + cent_sum - 2.0 * cross + penalty
    # Fused argmin: one lane reduction of dist*K_PAD + cluster_id (exact in f32,
    # dist <= 66 so the encoding stays < 2^24), then decode the id.
    enc = dist * float(K_PAD) + col_idx
    enc_min = jnp.min(enc, axis=-1, keepdims=True)                     # (tile, 1)
    idx = enc_min - float(K_PAD) * jnp.floor(enc_min * (1.0 / K_PAD))
    onehot = jnp.where(jnp.logical_and(col_idx == idx, valid),
                       1.0, 0.0).astype(bf16)                          # (tile, K_PAD)

    # Per-bit / per-cluster counts: contraction over rows (no transposed copy of
    # bits needed); row BITS of the result is the per-cluster member count.
    bcnt_ref[...] += lax.dot_general(bits, onehot, (((0,), (0,)), ((), ())),
                                     preferred_element_type=f32)

    # Lane-dense cluster ids for this row tile (ids <= 127 are exact in bf16).
    clusters_ref[...] = lax.dot_general(
        col_idx.astype(bf16), onehot, (((1,), (1,)), ((), ())),
        preferred_element_type=f32).astype(jnp.int32)                  # (1, tile)

    @pl.when(jnp.logical_and(r == n_tiles - 1, it < last_sweep))
    def _():
        bcnt = bcnt_ref[...]
        cnt = bcnt[BITS:BITS + 1, :]                                   # (1, K_PAD)
        new_cent = jnp.where(2.0 * bcnt > cnt, 1.0, 0.0)               # per-bit majority
        cent_ref[...] = jnp.where(cnt > 0.0, new_cent,
                                  cent_t.astype(f32)).astype(bf16)     # keep empty

    @pl.when(jnp.logical_and(r == n_tiles - 1, it == last_sweep))
    def _():
        counts_ref[...] = bcnt_ref[...][BITS:BITS + 1, :].astype(jnp.int32)


def lsh_kmeans_from_planes(x_pad, seq_len, k, n_iter, w, b, tm):
    """x_pad: (l_pad, E) f32 zero-padded rows; w: (E, BITS) f32; b: (BITS,) f32."""
    l_pad, e = x_pad.shape
    w_pad = jnp.zeros((e, BITS_PAD), jnp.float32).at[:, :BITS].set(w)
    b_pad = jnp.zeros((1, BITS_PAD), jnp.float32).at[0, :BITS].set(b)

    # pass 1: row-tiled LSH hashing (bf16 MXU operands, f32 accumulation)
    bits = pl.pallas_call(
        functools.partial(_hash_kernel, seq_len=seq_len),
        out_shape=jax.ShapeDtypeStruct((l_pad, BITS_PAD), jnp.bfloat16),
        grid=(l_pad // tm,),
        in_specs=[pl.BlockSpec((tm, e), lambda i: (i, 0)),
                  pl.BlockSpec((e, BITS_PAD), lambda i: (0, 0)),
                  pl.BlockSpec((1, BITS_PAD), lambda i: (0, 0))],
        out_specs=pl.BlockSpec((tm, BITS_PAD), lambda i: (i, 0)),
        compiler_params=pltpu.CompilerParams(
            dimension_semantics=("parallel",), vmem_limit_bytes=_VMEM_LIMIT),
    )(x_pad, w_pad, b_pad)

    # Centroid init: k evenly spaced seed rows, gathered outside the kernel (tiny
    # (k, 128) gather) instead of an (L, K_PAD) one-hot selection matmul.
    # TODO(synk): fast_transformers' hamming k-means uses its own centroid init /
    # empty-cluster handling; deterministic evenly spaced seeds with majority-vote
    # updates are used here (the discarded `torch.unique(hashes)` call is skipped).
    seed_rows = (jnp.arange(k, dtype=jnp.int32) * seq_len) // k
    cent_init = jnp.zeros((BITS_PAD, K_PAD), jnp.bfloat16).at[:, :k].set(
        bits[seed_rows].T)

    # pass 2: row-tiled Hamming k-means sweeps.
    # TODO(synk): on v7x the sweep could additionally be sharded across the two
    # TensorCores (core_map with per-core bcnt partials reduced on core 0).
    n_tiles = l_pad // tm
    clusters, counts = pl.pallas_call(
        functools.partial(_kmeans_kernel, seq_len=seq_len, k=k, tile_rows=tm),
        out_shape=(jax.ShapeDtypeStruct((1, l_pad), jnp.int32),
                   jax.ShapeDtypeStruct((1, K_PAD), jnp.int32)),
        grid=(n_iter + 1, n_tiles),
        in_specs=[pl.BlockSpec((tm, BITS_PAD), lambda it, r: (r, 0)),
                  pl.BlockSpec((BITS_PAD, K_PAD), lambda it, r: (0, 0))],
        out_specs=(pl.BlockSpec((1, tm), lambda it, r: (0, r)),
                   pl.BlockSpec((1, K_PAD), lambda it, r: (0, 0))),
        scratch_shapes=[pltpu.VMEM((BITS_PAD, K_PAD), jnp.bfloat16),   # centroids^T
                        pltpu.VMEM((BITS_PAD, K_PAD), jnp.float32)],   # bit/row counts
        compiler_params=pltpu.CompilerParams(
            dimension_semantics=("arbitrary", "arbitrary"),
            vmem_limit_bytes=_VMEM_LIMIT),
    )(bits, cent_init)
    # torch returns clusters.squeeze().long(); int32 kept here (JAX x64 disabled).
    return clusters[0, :seq_len], counts[0, :k]


class Cluster:
    """JAX / Pallas port of util.cluster.Cluster (forward pass only)."""

    def __init__(self, n_iter, down_dim=-1, seed=0):
        self.n_iter = n_iter
        self.bits = BITS
        self.down_dim = down_dim
        self.hash_bias = True
        # deterministic stand-in for planes = normal_(Q.new_empty((bits, E+1)))
        self._plane_key = jax.random.PRNGKey(seed + 1234)

    def forward(self, x, k):
        assert 0 < k <= K_PAD
        seq_len, e = x.shape
        l_pad, tm = _row_tiling(seq_len)
        x_pad = jnp.zeros((l_pad, e), jnp.float32).at[:seq_len].set(
            x.astype(jnp.float32))

        if self.down_dim > 0:
            # PCA fit on x; the down-projection is folded into the LSH hyperplanes
            # (w_eff = proj @ w, b_eff = b - mean @ proj @ w), so the projected
            # activations never round-trip through HBM.
            mean, proj = _pca_fit(x_pad, seq_len, self.down_dim, tm)
            hd = self.down_dim
            planes = jax.random.normal(self._plane_key, (BITS, hd + 1), jnp.float32)
            w_raw = planes[:, :hd].T                                   # (hd, BITS)
            bias = (planes[:, hd] if self.hash_bias
                    else jnp.zeros((BITS,), jnp.float32))
            w = proj @ w_raw                                           # (e, BITS)
            b = bias - (mean @ proj @ w_raw)[0]                        # (BITS,)
        else:
            planes = jax.random.normal(self._plane_key, (BITS, e + 1), jnp.float32)
            w = planes[:, :e].T
            b = (planes[:, e] if self.hash_bias
                 else jnp.zeros((BITS,), jnp.float32))

        return lsh_kmeans_from_planes(x_pad, seq_len, k, self.n_iter, w, b, tm)


if __name__ == "__main__":
    key = jax.random.PRNGKey(0)
    L, E, k = 200, 32, 4                      # L deliberately not a multiple of 128
    x = jax.random.normal(key, (L, E), dtype=jnp.float32)

    model = Cluster(n_iter=10, down_dim=16)
    clusters, counts = model.forward(x, k)
    clusters, counts = jax.block_until_ready((clusters, counts))

    assert clusters.shape == (L,) and clusters.dtype == jnp.int32
    assert counts.shape == (k,) and counts.dtype == jnp.int32
    assert int(jnp.sum(counts)) == L
    assert 0 <= int(jnp.min(clusters)) and int(jnp.max(clusters)) < k
    print("KERNEL_OK")
</pallas_src>

<mosaic_0001>
module attributes {stable_mosaic.version = 11 : i64} {
  func.func @_gram_colsum_kernel(%arg0: i32, %arg1: memref<256x32xf32, #tpu.memory_space<vmem>>, %arg2: memref<32x32xf32, #tpu.memory_space<vmem>>, %arg3: memref<1x32xf32, #tpu.memory_space<vmem>>) attributes {dimension_semantics = [#tpu.dimension_semantics<arbitrary>], iteration_bounds = array<i64: 1>, scalar_prefetch = 0 : i64, scratch_operands = 0 : i64, tpu.core_type = #tpu.core_type<tc>, window_params = [{transform_indices = @transform_0, window_bounds = array<i64: 256, 32>}, {pipeline_mode = #tpu.pipeline_mode<synchronous>, transform_indices = @transform_1, window_bounds = array<i64: 32, 32>}, {pipeline_mode = #tpu.pipeline_mode<synchronous>, transform_indices = @transform_2, window_bounds = array<i64: 1, 32>}]} {
    %c0_i32 = arith.constant 0 : i32
    %0 = arith.cmpi eq, %arg0, %c0_i32 : i32
    %1 = arith.extui %0 : i1 to i32
    %c0_i32_0 = arith.constant 0 : i32
    %2 = arith.cmpi ne, %1, %c0_i32_0 : i32
    scf.if %2 {
      %cst_11 = arith.constant 0.000000e+00 : f32
      %13 = vector.broadcast %cst_11 : f32 to vector<32x32xf32>
      %c0_12 = arith.constant 0 : index
      %c0_13 = arith.constant 0 : index
      %14 = vector.load %arg2[%c0_12, %c0_13] : memref<32x32xf32, #tpu.memory_space<vmem>>, vector<32x32xf32>
      tpu.vector_store %arg2[%c0_12, %c0_13], %13 {strides = array<i32>} : memref<32x32xf32, #tpu.memory_space<vmem>>, vector<32x32xf32>,
      %cst_14 = arith.constant 0.000000e+00 : f32
      %15 = vector.broadcast %cst_14 : f32 to vector<1x32xf32>
      %c0_15 = arith.constant 0 : index
      %c0_16 = arith.constant 0 : index
      %16 = vector.load %arg3[%c0_15, %c0_16] : memref<1x32xf32, #tpu.memory_space<vmem>>, vector<1x32xf32>
      tpu.vector_store %arg3[%c0_15, %c0_16], %15 {strides = array<i32>} : memref<1x32xf32, #tpu.memory_space<vmem>>, vector<1x32xf32>,
    } else {
    }
    %c0 = arith.constant 0 : index
    %c0_1 = arith.constant 0 : index
    %3 = vector.load %arg1[%c0, %c0_1] : memref<256x32xf32, #tpu.memory_space<vmem>>, vector<256x32xf32>
    %c0_2 = arith.constant 0 : index
    %c0_3 = arith.constant 0 : index
    %4 = vector.load %arg2[%c0_2, %c0_3] : memref<32x32xf32, #tpu.memory_space<vmem>>, vector<32x32xf32>
    %cst = arith.constant dense<0.000000e+00> : vector<32x32xf32>
    %5 = tpu.matmul %3, %3, %cst {dimension_numbers = #tpu.dot_dimension_numbers<[0], [0], [1], [1], [0, 1, 1, 1], [], []>} : vector<256x32xf32>, vector<256x32xf32>, vector<32x32xf32> -> vector<32x32xf32>
    %6 = arith.addf %4, %5 : vector<32x32xf32>
    %c0_4 = arith.constant 0 : index
    %c0_5 = arith.constant 0 : index
    %7 = vector.load %arg2[%c0_4, %c0_5] : memref<32x32xf32, #tpu.memory_space<vmem>>, vector<32x32xf32>
    tpu.vector_store %arg2[%c0_4, %c0_5], %6 {strides = array<i32>} : memref<32x32xf32, #tpu.memory_space<vmem>>, vector<32x32xf32>,
    %c0_6 = arith.constant 0 : index
    %c0_7 = arith.constant 0 : index
    %8 = vector.load %arg3[%c0_6, %c0_7] : memref<1x32xf32, #tpu.memory_space<vmem>>, vector<1x32xf32>
    %cst_8 = arith.constant dense<0.000000e+00> : vector<32xf32>
    %9 = vector.multi_reduction <add>, %3, %cst_8 [0] : vector<256x32xf32> to vector<32xf32>
    %10 = vector.shape_cast %9 : vector<32xf32> to vector<1x32xf32>
    %11 = arith.addf %8, %10 : vector<1x32xf32>
    %c0_9 = arith.constant 0 : index
    %c0_10 = arith.constant 0 : index
    %12 = vector.load %arg3[%c0_9, %c0_10] : memref<1x32xf32, #tpu.memory_space<vmem>>, vector<1x32xf32>
    tpu.vector_store %arg3[%c0_9, %c0_10], %11 {strides = array<i32>} : memref<1x32xf32, #tpu.memory_space<vmem>>, vector<1x32xf32>,
    return
  }
  func.func @transform_0(%arg0: i32) -> (i32, i32) {
    %c0_i32 = arith.constant 0 : i32
    %c0_i32_0 = arith.constant 0 : i32
    return %arg0, %c0_i32 : i32, i32
  }
  func.func @transform_1(%arg0: i32) -> (i32, i32) {
    %c0_i32 = arith.constant 0 : i32
    %c0_i32_0 = arith.constant 0 : i32
    %c0_i32_1 = arith.constant 0 : i32
    return %c0_i32, %c0_i32_0 : i32, i32
  }
  func.func @transform_2(%arg0: i32) -> (i32, i32) {
    %c0_i32 = arith.constant 0 : i32
    %c0_i32_0 = arith.constant 0 : i32
    %c0_i32_1 = arith.constant 0 : i32
    return %c0_i32, %c0_i32_0 : i32, i32
  }
}

</mosaic_0001>

<bundles_post_ra>
// kernel: tpu_custom_call.1
= control target key start
LH: loop header
LB: loop body
LE: loop exit
PB: predicated region body
PF: predicated region fallthrough
CT: control target
= control target key end

     0   :  { %8 = vsyncpa [#allocation3], 0  ;;  %s760_s0 = inlined_call_operand.hbm [shape: f32[256,32], index: 0, kind: input, shape index: {}]   ;;  %s761_s1 = inlined_call_operand.hbm [shape: f32[32,32], index: 1, kind: output, shape index: {0}]   ;;  %s762_s2 = inlined_call_operand.hbm [shape: f32[1,32], index: 2, kind: output, shape index: {1}]  }
   0x1   :  { %9 = vsyncpa [#allocation4], 0 }
   0x2   :  { %10 = vsyncpa [#allocation7], 0  ;;  %s557_s9 = smov [#allocation2]   ;;  %s485_s13 = scalar_lea.hbm %s760_s0, 4096 }
   0x3   :  { %s16_s10 = sshll.u32 %s557_s9, 4  ;;  %p486_p0 = scmp.ne.s32.totalorder %s760_s0, %s485_s13  ;;  %s17_s10 = int_to_ptr.vmem [resolvable:$true] %s16_s10 }
   0x4   :  { %p489_p1 = scmp.lt.u32.totalorder %s485_s13, %s760_s0 }
   0x6   :  { %p491_p2 = pnand %p489_p1, %p486_p0 }
   0x8   :  { %494 = shalt.err (!%p491_p2)
}
   0x9   :  { %s495_s18 = scalar_lea.vmem %s17_s10, 4096  ;;  %p500_p4 = scmp.lt.s32.totalorder %s17_s10, %s17_s10 }
   0xa   :  { %p496_p3 = scmp.ne.s32.totalorder %s17_s10, %s495_s18  ;;  %p501_p5 = scmp.lt.s32.totalorder %s495_s18, %s495_s18 }
   0xc   :  { %p502_p6 = por %p501_p5, %p500_p4 }
   0xe   :  { %p503_p7 = pnand %p502_p6, %p496_p3 }
  0x10   :  { %506 = shalt.err (!%p503_p7)
}
  0x11   :  { %s558_s19 = smov 128   ;;  %s559_s20 = smov 8  }
  0x12   :  { %22 = dma.hbm_to_vmem [thread:$0]  %s760_s0, 4096, %s17_s10, [#allocation3], %s558_s19, %s558_s19, %s559_s20  }
  0x13   :  { %551 = dma.done.wait [#allocation3], 4096  }
  0x14   :  { %552 = vsyncadd [#allocation3], 4294963200  ;;  %vm30_vm0 = vcmask 261120   ;;  %v37_v0 = vld [vmem:[#allocation2] sm:$0xff]  ;;  %v38_v2 = vld [vmem:[#allocation2 + $0x8] sm:$0xff]  ;;  %vm35_vm1 = vcmask 253952  }
  0x15   :  { %v593_v1 = vld [vmem:[#allocation2 + $0x80] sm:$0xff]  ;;  %v232_v4 = vsel %vm30_vm0, %v37_v0, 0.0  ;;  %v597_v5 = vld [vmem:[#allocation2 + $0x88] sm:$0xff]  ;;  %v233_v6 = vsel %vm30_vm0, %v38_v2, 0.0  ;;  %v39_v8 = vld [vmem:[#allocation2 + $0x10] sm:$0xff]  ;;  %v381_v38 = vpack.c.bf16 %v38_v2, %v37_v0  ;;  %s561_s0 = smov [#allocation6]  }
  0x16   :  { %v433_v3 = vpack.i.bf16 %v37_v0, %v593_v1  ;;  %v234_v7 = vadd.f32 %v233_v6, %v232_v4  ;;  %v435_v9 = vpack.i.bf16 %v38_v2, %v597_v5  ;;  %v235_v10 = vsel %vm30_vm0, %v39_v8, 0.0  ;;  %v40_v11 = vld [vmem:[#allocation2 + $0x18] sm:$0xff]  ;;  %v602_v12 = vld [vmem:[#allocation2 + $0x90] sm:$0xff]  ;;  %v41_v15 = vld [vmem:[#allocation2 + $0x20] sm:$0xff]  ;;  %s322_s23 = sshll.u32 %s561_s0, 4  ;;  %s323_s23 = int_to_ptr.vmem [resolvable:$true] %s322_s23 }
  0x17   :  { %v237_v14 = vsel %vm30_vm0, %v40_v11, 0.0  ;;  %v239_v16 = vsel %vm30_vm0, %v41_v15, 0.0  ;;  %v42_v18 = vld [vmem:[#allocation2 + $0x28] sm:$0xff]  ;;  %v437_v19 = vpack.i.bf16 %v39_v8, %v602_v12  ;;  %v608_v21 = vld [vmem:[#allocation2 + $0x98] sm:$0xff]  ;;  %v610_v23 = vld [vmem:[#allocation2 + $0x30] sm:$0xff]  ;;  %v379_v35 = vpack.c.bf16 %v597_v5, %v593_v1  ;;  %s507_s24 = scalar_lea.vmem %s323_s23, 16  ;;  %p512_p9 = scmp.lt.s32.totalorder %s323_s23, %s323_s23 }
  0x18   :  { %434 = vxpose.xlu0.b32.start [1/16] (narrow) %v433_v3, 32  ;;  %v236_v13 = vadd.f32 %v235_v10, %v234_v7  ;;  %v241_v20 = vsel %vm30_vm0, %v42_v18, 0.0  ;;  %v243_v24 = vsel %vm30_vm0, %v610_v23, 0.0  ;;  %v614_v26 = vld [vmem:[#allocation2 + $0x38] sm:$0xff]  ;;  %v439_v27 = vpack.i.bf16 %v40_v11, %v608_v21  ;;  %v619_v29 = vld [vmem:[#allocation2 + $0xa0] sm:$0xff]  ;;  %v625_v34 = vld [vmem:[#allocation2 + $0x48] sm:$0xff]  ;;  %p508_p8 = scmp.ne.s32.totalorder %s323_s23, %s507_s24 }
  0x19   :  { %v245_v28 = vsel %vm30_vm0, %v614_v26, 0.0  ;;  %v621_v31 = vld [vmem:[#allocation2 + $0x40] sm:$0xff]  ;;  %v441_v36 = vpack.i.bf16 %v41_v15, %v619_v29  ;;  %v249_v37 = vsel %vm30_vm0, %v625_v34, 0.0  ;;  %v383_v39 = vpack.c.bf16 %v608_v21, %v602_v12  ;;  %v634_v40 = vld [vmem:[#allocation2 + $0xa8] sm:$0xff]  ;;  %v636_v42 = vld [vmem:[#allocation2 + $0x50] sm:$0xff]  ;;  %380 = vmatprep.subr.bf16.mxu0 %v379_v35  ;;  %411 = vmatprep.subr.bf16.mxu1 %v379_v35  ;;  %s511_s25 = scalar_lea.vmem %s323_s23, 32 }
  0x1a   :  { %v238_v17 = vadd.f32 %v237_v14, %v236_v13  ;;  %v247_v32 = vsel %vm30_vm0, %v621_v31, 0.0  ;;  %v251_v43 = vsel %vm30_vm0, %v636_v42, 0.0  ;;  %382 = vmatpush3.bf16.msra.mxu0 %v381_v38  ;;  %v385_v44 = vpack.c.bf16 %v40_v11, %v39_v8  ;;  %419 = vmatpush3.bf16.msra.mxu1 %v381_v38  ;;  %v640_v46 = vld [vmem:[#allocation2 + $0x58] sm:$0xff]  ;;  %v647_v50 = vld [vmem:[#allocation2 + $0xb0] sm:$0xff]  ;;  %v649_v52 = vld [vmem:[#allocation2 + $0x60] sm:$0xff]  ;;  %p513_p10 = scmp.lt.s32.totalorder %s511_s25, %s507_s24 }
  0x1b   :  { %384 = vmatprep.subr.bf16.mxu0 %v383_v39  ;;  %v387_v47 = vpack.c.bf16 %v634_v40, %v619_v29  ;;  %412 = vmatprep.subr.bf16.mxu1 %v383_v39  ;;  %v443_v48 = vpack.i.bf16 %v42_v18, %v634_v40  ;;  %v253_v49 = vsel %vm30_vm0, %v640_v46, 0.0  ;;  %v651_v53 = vld [vmem:[#allocation2 + $0xb8] sm:$0xff]  ;;  %v255_v54 = vsel %vm30_vm0, %v649_v52, 0.0  ;;  %v655_v57 = vld [vmem:[#allocation2 + $0x68] sm:$0xff]  ;;  %v663_v62 = vld [vmem:[#allocation2 + $0x70] sm:$0xff] }
  0x1c   :  { %436 = vxpose.xlu0.b32.cont [2/16] (narrow) %v435_v9, 32  ;;  %v240_v22 = vadd.f32 %v239_v16, %v238_v17  ;;  %v389_v55 = vpack.c.bf16 %v42_v18, %v41_v15  ;;  %v391_v58 = vpack.c.bf16 %v651_v53, %v647_v50  ;;  %v445_v59 = vpack.i.bf16 %v610_v23, %v647_v50  ;;  %v665_v63 = vld [vmem:[#allocation2 + $0xc0] sm:$0xff]  ;;  %v667_v0 = vld [vmem:[#allocation2 + $0xc8] sm:$0xff]  ;;  %v673_v6 = vld [vmem:[#allocation2 + $0x78] sm:$0xff]  ;;  %p514_p11 = por %p513_p10, %p512_p9 }
  0x1d   :  { %v257_v60 = vsel %vm30_vm0, %v655_v57, 0.0  ;;  %v259_v2 = vsel %vm30_vm0, %v663_v62, 0.0  ;;  %v393_v3 = vpack.c.bf16 %v614_v26, %v610_v23  ;;  %v395_v7 = vpack.c.bf16 %v667_v0, %v665_v63  ;;  %v63_v13 = vld [vmem:[#allocation2 + $0xd0] sm:$0xff]  ;;  %v64_v14 = vld [vmem:[#allocation2 + $0xd8] sm:$0xff]  ;;  %v66_v23 = vld [vmem:[#allocation2 + $0xe8] sm:$0xff] }
  0x1e   :  { %v242_v25 = vadd.f32 %v241_v20, %v240_v22  ;;  %386 = vmatpush3.bf16.msra.mxu0 %v385_v44  ;;  %420 = vmatpush3.bf16.msra.mxu1 %v385_v44  ;;  %v447_v8 = vpack.i.bf16 %v614_v26, %v651_v53  ;;  %v261_v9 = vsel %vm30_vm0, %v673_v6, 0.0  ;;  %v263_v11 = vsel %vm30_vm0, %v593_v1, 0.0  ;;  %v65_v22 = vld [vmem:[#allocation2 + $0xe0] sm:$0xff]  ;;  %p515_p12 = pnand %p514_p11, %p508_p8 }
  0x1f   :  { %388 = vmatprep.subr.bf16.mxu0 %v387_v47  ;;  %413 = vmatprep.subr.bf16.mxu1 %v387_v47  ;;  %v397_v15 = vpack.c.bf16 %v625_v34, %v621_v31  ;;  %v399_v17 = vpack.c.bf16 %v64_v14, %v63_v13  ;;  %v265_v18 = vsel %vm30_vm0, %v597_v5, 0.0  ;;  %v267_v1 = vsel %vm30_vm0, %v602_v12, 0.0 }
  0x20   :  { %438 = vxpose.xlu0.b32.cont [3/16] (narrow) %v437_v19, 32  ;;  %v244_v30 = vadd.f32 %v243_v24, %v242_v25  ;;  %v449_v19 = vpack.i.bf16 %v621_v31, %v665_v63  ;;  %v401_v24 = vpack.c.bf16 %v640_v46, %v636_v42  ;;  %v403_v26 = vpack.c.bf16 %v66_v23, %v65_v22  ;;  %v68_v31 = vld [vmem:[#allocation2 + $0xf8] sm:$0xff] }
  0x21   :  { %v269_v5 = vsel %vm30_vm0, %v608_v21, 0.0  ;;  %v271_v12 = vsel %vm30_vm0, %v619_v29, 0.0  ;;  %v273_v21 = vsel %vm30_vm0, %v634_v40, 0.0  ;;  %v275_v29 = vsel %vm30_vm0, %v647_v50, 0.0 }
  0x22   :  { %v246_v33 = vadd.f32 %v245_v28, %v244_v30  ;;  %390 = vmatpush3.bf16.msra.mxu0 %v389_v55  ;;  %421 = vmatpush3.bf16.msra.mxu1 %v389_v55  ;;  %v67_v30 = vld [vmem:[#allocation2 + $0xf0] sm:$0xff]  ;;  %v277_v39 = vsel %vm30_vm0, %v651_v53, 0.0  ;;  %v455_v40 = vpack.i.bf16 %v640_v46, %v64_v14  ;;  %v281_v44 = vsel %vm30_vm0, %v667_v0, 0.0 }
  0x23   :  { %392 = vmatprep.subr.bf16.mxu0 %v391_v58  ;;  %414 = vmatprep.subr.bf16.mxu1 %v391_v58  ;;  %v407_v35 = vpack.c.bf16 %v68_v31, %v67_v30  ;;  %v285_v50 = vsel %vm30_vm0, %v64_v14, 0.0  ;;  %v459_v46 = vpack.i.bf16 %v655_v57, %v66_v23  ;;  %v287_v53 = vsel %vm30_vm0, %v65_v22, 0.0 }
  0x24   :  { %440 = vxpose.xlu0.b32.cont [4/16] (narrow) %v439_v27, 32  ;;  %v248_v41 = vadd.f32 %v247_v32, %v246_v33  ;;  %v451_v27 = vpack.i.bf16 %v625_v34, %v667_v0  ;;  %v405_v32 = vpack.c.bf16 %v655_v57, %v649_v52  ;;  %v453_v34 = vpack.i.bf16 %v636_v42, %v63_v13 }
  0x25   :  { %v279_v42 = vsel %vm30_vm0, %v665_v63, 0.0  ;;  %v289_v55 = vsel %vm30_vm0, %v66_v23, 0.0 }
  0x26   :  { %v250_v45 = vadd.f32 %v249_v37, %v248_v41  ;;  %394 = vmatpush3.bf16.msra.mxu0 %v393_v3  ;;  %422 = vmatpush3.bf16.msra.mxu1 %v393_v3  ;;  %v409_v37 = vpack.c.bf16 %v673_v6, %v663_v62 }
  0x27   :  { %396 = vmatprep.subr.bf16.mxu0 %v395_v7  ;;  %415 = vmatprep.subr.bf16.mxu1 %v395_v7 }
  0x28   :  { %442 = vxpose.xlu0.b32.cont [5/16] (narrow) %v441_v36, 32  ;;  %v252_v51 = vadd.f32 %v251_v43, %v250_v45  ;;  %v457_v45 = vpack.i.bf16 %v649_v52, %v65_v22  ;;  %v291_v52 = vsel %vm30_vm0, %v67_v30, 0.0 }
  0x2a   :  { %v254_v56 = vadd.f32 %v253_v49, %v252_v51  ;;  %398 = vmatpush3.bf16.msra.mxu0 %v397_v15  ;;  %423 = vmatpush3.bf16.msra.mxu1 %v397_v15  ;;  %v560_v15 = vmov 0.0  }
  0x2b   :  { %400 = vmatprep.subr.bf16.mxu0 %v399_v17  ;;  %416 = vmatprep.subr.bf16.mxu1 %v399_v17  ;;  %31 = vst.msk [vmem:[#allocation5] sm:$0xff] %vm30_vm0, %v560_v15  ;;  %32 = vst.msk [vmem:[#allocation5 + $0x8] sm:$0xff] %vm30_vm0, %v560_v15 }
  0x2c   :  { %444 = vxpose.xlu0.b32.cont [6/16] (narrow) %v443_v48, 32  ;;  %v256_v61 = vadd.f32 %v255_v54, %v254_v56  ;;  %v283_v48 = vsel %vm30_vm0, %v63_v13, 0.0  ;;  %v461_v56 = vpack.i.bf16 %v663_v62, %v67_v30  ;;  %33 = vst.msk [vmem:[#allocation5 + $0x10] sm:$0xff] %vm30_vm0, %v560_v15  ;;  %34 = vst.msk [vmem:[#allocation5 + $0x18] sm:$0xff] %vm30_vm0, %v560_v15 }
  0x2d   :  { %36 = vst.msk [vmem:[#allocation6] sm:$0x1] %vm35_vm1, %v560_v15 }
  0x2e   :  { %v258_v4 = vadd.f32 %v257_v60, %v256_v61  ;;  %402 = vmatpush3.bf16.msra.mxu0 %v401_v24  ;;  %424 = vmatpush3.bf16.msra.mxu1 %v401_v24  ;;  %v293_v60 = vsel %vm30_vm0, %v68_v31, 0.0  ;;  %v463_v61 = vpack.i.bf16 %v673_v6, %v68_v31 }
  0x2f   :  { %404 = vmatprep.subr.bf16.mxu0 %v403_v26  ;;  %417 = vmatprep.subr.bf16.mxu1 %v403_v26 }
  0x30   :  { %446 = vxpose.xlu0.b32.cont [7/16] (narrow) %v445_v59, 32  ;;  %v260_v10 = vadd.f32 %v259_v2, %v258_v4 }
  0x32   :  { %v262_v16 = vadd.f32 %v261_v9, %v260_v10  ;;  %406 = vmatpush3.bf16.msra.mxu0 %v405_v32  ;;  %425 = vmatpush3.bf16.msra.mxu1 %v405_v32 }
  0x33   :  { %408 = vmatprep.subr.bf16.mxu0 %v407_v35  ;;  %418 = vmatprep.subr.bf16.mxu1 %v407_v35 }
  0x34   :  { %448 = vxpose.xlu0.b32.cont [8/16] (narrow) %v447_v8, 32  ;;  %v264_v20 = vadd.f32 %v263_v11, %v262_v16 }
  0x36   :  { %v266_v25 = vadd.f32 %v265_v18, %v264_v20  ;;  %410 = vmatpush3.bf16.msra.mxu0 %v409_v37  ;;  %426 = vmatpush3.bf16.msra.mxu1 %v409_v37 }
  0x38   :  { %450 = vxpose.xlu0.b32.cont [9/16] (narrow) %v449_v19, 32  ;;  %v268_v28 = vadd.f32 %v267_v1, %v266_v25  ;;  %v231_v1 = vld [vmem:[#allocation6] sm:$0x1] }
  0x3a   :  { %v270_v33 = vadd.f32 %v269_v5, %v268_v28 }
  0x3c   :  { %452 = vxpose.xlu0.b32.cont [10/16] (narrow) %v451_v27, 32  ;;  %v272_v36 = vadd.f32 %v271_v12, %v270_v33 }
  0x3e   :  { %v274_v38 = vadd.f32 %v273_v21, %v272_v36 }
  0x40   :  { %454 = vxpose.xlu0.b32.cont [11/16] (narrow) %v453_v34, 32  ;;  %v276_v41 = vadd.f32 %v275_v29, %v274_v38 }
  0x42   :  { %v278_v43 = vadd.f32 %v277_v39, %v276_v41 }
  0x44   :  { %456 = vxpose.xlu0.b32.cont [12/16] (narrow) %v455_v40, 32  ;;  %v280_v47 = vadd.f32 %v279_v42, %v278_v43 }
  0x46   :  { %v282_v49 = vadd.f32 %v281_v44, %v280_v47 }
  0x48   :  { %458 = vxpose.xlu0.b32.cont [13/16] (narrow) %v457_v45, 32  ;;  %v284_v51 = vadd.f32 %v283_v48, %v282_v49 }
  0x4a   :  { %v286_v54 = vadd.f32 %v285_v50, %v284_v51 }
  0x4c   :  { %460 = vxpose.xlu0.b32.cont [14/16] (narrow) %v459_v46, 32  ;;  %v288_v58 = vadd.f32 %v287_v53, %v286_v54 }
  0x4e   :  { %v290_v59 = vadd.f32 %v289_v55, %v288_v58 }
  0x50   :  { %462 = vxpose.xlu0.b32.cont [15/16] (narrow) %v461_v56, 32  ;;  %v292_v63 = vadd.f32 %v291_v52, %v290_v59 }
  0x52   :  { %v294_v57 = vadd.f32 %v293_v60, %v292_v63 }
  0x54   :  { %464 = vxpose.xlu0.b32.end [16/16] (narrow) %v463_v61, 32  ;;  %v295_v14 = vrot.slane %v294_v57, 4 }
  0x56   :  { %v296_v16 = vadd.f32 %v295_v14, %v294_v57 }
  0x58   :  { %v297_v17 = vrot.slane %v296_v16, 2 }
  0x5a   :  { %v298_v18 = vadd.f32 %v297_v17, %v296_v16 }
  0x5c   :  { %v299_v19 = vrot.slane %v298_v18, 1 }
  0x5e   :  { %v300_v20 = vadd.f32 %v299_v19, %v298_v18 }
  0x60   :  { %v301_v22 = vadd.f32 %v300_v20, %v231_v1 }
  0x62   :  { %303 = vst.msk [vmem:[#allocation6] sm:$0x1] %vm35_vm1, %v301_v22 }
  0x98   :  { %v465_v0 = vpop.trf.xlu0 }
  0x99   :  { %v466_v2 = vunpack.i.l.bf16 %v465_v0  ;;  %v469_v3 = vunpack.i.h.bf16 %v465_v0 }
  0x9b   :  { %201 = vmatprep.mubr.f32.mxu0 %v466_v2 }
  0x9c   :  { %v470_v4 = vpop.trf.xlu0  ;;  %202 = vmatmul.mubr.f32.vlgmr.msra.gmra.mrb[0].mxu0 %v469_v3 }
  0x9d   :  { %v471_v7 = vunpack.i.l.bf16 %v470_v4  ;;  %v474_v62 = vunpack.i.h.bf16 %v470_v4 }
  0x9f   :  { %206 = vmatprep.mubr.f32.mxu0 %v471_v7 }
  0xa0   :  { %v475_v8 = vpop.trf.xlu0  ;;  %207 = vmatmul.mubr.f32.gmra.mrb[2].mxu0 %v474_v62 }
  0xa1   :  { %v476_v9 = vunpack.i.l.bf16 %v475_v8  ;;  %v479_v10 = vunpack.i.h.bf16 %v475_v8 }
  0xa3   :  { %211 = vmatprep.mubr.f32.mxu1 %v476_v9 }
  0xa4   :  { %v480_v11 = vpop.trf.xlu0  ;;  %212 = vmatmul.mubr.f32.vlgmr.msra.gmra.mrb[0].mxu1 %v479_v10 }
  0xa5   :  { %v484_v6 = vunpack.i.h.bf16 %v480_v11  ;;  %v481_v13 = vunpack.i.l.bf16 %v480_v11 }
  0xa7   :  { %216 = vmatprep.mubr.f32.mxu1 %v481_v13 }
  0xa8   :  { %217 = vmatmul.mubr.f32.gmra.mrb[2].mxu1 %v484_v6 }
  0xa9   :  { %518 = shalt.err (!%p515_p12)
}
  0xaa   :  { %s519_s28 = scalar_lea.hbm %s762_s2, 16 }
  0xab   :  { %p520_p13 = scmp.ne.s32.totalorder %s762_s2, %s519_s28  ;;  %p523_p0 = scmp.lt.u32.totalorder %s519_s28, %s762_s2 }
  0xad   :  { %p525_p1 = pnand %p523_p0, %p520_p13 }
  0xaf   :  { %528 = shalt.err (!%p525_p1)
}
  0xb0   :  { %325 = dma.vmem_to_hbm [thread:$0]  %s323_s23, 16, %s762_s2, [#allocation7]   ;;  %v69_v24 = vld [vmem:[#allocation5] sm:$0xff]  ;;  %v70_v28 = vld [vmem:[#allocation5 + $0x8] sm:$0xff]  ;;  %v71_v33 = vld [vmem:[#allocation5 + $0x10] sm:$0xff] }
  0xb1   :  { %v72_v29 = vld [vmem:[#allocation5 + $0x18] sm:$0xff]  ;;  %s562_s2 = smov [#allocation5]  }
  0xb2   :  { %s309_s7 = sshll.u32 %s562_s2, 4  ;;  %s310_s7 = int_to_ptr.vmem [resolvable:$true] %s309_s7 }
  0xb3   :  { %s529_s8 = scalar_lea.vmem %s310_s7, 512  ;;  %p534_p3 = scmp.lt.s32.totalorder %s310_s7, %s310_s7 }
  0xb4   :  { %p530_p2 = scmp.ne.s32.totalorder %s310_s7, %s529_s8  ;;  %p535_p4 = scmp.lt.s32.totalorder %s529_s8, %s529_s8 }
  0xb6   :  { %p536_p5 = por %p535_p4, %p534_p3 }
  0xb8   :  { %p537_p6 = pnand %p536_p5, %p530_p2 }
 0x16f   :  { %v367_v23 = vpop.f32.mrb[0].mxu0 }
 0x170   :  { %v368_v25 = vpop.f32.mrb[1].mxu0 }
 0x171   :  { %v369_v26 = vadd.f32 %v368_v25, %v367_v23 }
 0x173   :  { %v222_v5 = vadd.f32 %v369_v26, %v69_v24  ;;  %v370_v27 = vpop.f32.mrb[2].mxu0 }
 0x174   :  { %v371_v12 = vpop.f32.mrb[3].mxu0 }
 0x175   :  { %227 = vst.msk [vmem:[#allocation5] sm:$0xff] %vm30_vm0, %v222_v5  ;;  %v372_v30 = vadd.f32 %v371_v12, %v370_v27 }
 0x177   :  { %v223_v31 = vadd.f32 %v372_v30, %v70_v28  ;;  %v373_v32 = vpop.f32.mrb[0].mxu1 }
 0x178   :  { %v374_v35 = vpop.f32.mrb[1].mxu1 }
 0x179   :  { %228 = vst.msk [vmem:[#allocation5 + $0x8] sm:$0xff] %vm30_vm0, %v223_v31  ;;  %v375_v21 = vadd.f32 %v374_v35, %v373_v32 }
 0x17b   :  { %v224_v34 = vadd.f32 %v375_v21, %v71_v33  ;;  %v376_v36 = vpop.f32.mrb[2].mxu1 }
 0x17c   :  { %v377_v37 = vpop.f32.mrb[3].mxu1 }
 0x17d   :  { %229 = vst.msk [vmem:[#allocation5 + $0x10] sm:$0xff] %vm30_vm0, %v224_v34  ;;  %v378_v38 = vadd.f32 %v377_v37, %v376_v36 }
 0x17f   :  { %v225_v39 = vadd.f32 %v378_v38, %v72_v29 }
 0x181   :  { %230 = vst.msk [vmem:[#allocation5 + $0x18] sm:$0xff] %vm30_vm0, %v225_v39 }
 0x182   :  { %540 = shalt.err (!%p537_p6)
}
 0x183   :  { %s541_s11 = scalar_lea.hbm %s761_s1, 512 }
 0x184   :  { %p542_p7 = scmp.ne.s32.totalorder %s761_s1, %s541_s11  ;;  %p545_p8 = scmp.lt.u32.totalorder %s541_s11, %s761_s1 }
 0x186   :  { %p547_p9 = pnand %p545_p8, %p542_p7 }
 0x188   :  { %550 = shalt.err (!%p547_p9)
}
 0x189   :  { %315 = dma.vmem_to_hbm [thread:$0]  %s310_s7, 512, %s761_s1, [#allocation4], %s558_s19, %s558_s19, %s559_s20  }
 0x18a   :  { %553 = dma.done.wait [#allocation4], 512  }
 0x18b   :  { %554 = vsyncadd [#allocation4], 4294966784 }
 0x18c   :  { %555 = dma.done.wait [#allocation7], 16  }
 0x18d   :  { %556 = vsyncadd [#allocation7], 4294967280 }
 0x18e   :  { %332 = vsyncpa [#allocation3], 1 }
 0x18f   :  { %333 = vsyncpa [#allocation4], 1 }
 0x190   :  { %334 = vsyncpa [#allocation7], 1 }

</bundles_post_ra>
